<compile_context>
chip_gen: v6e
topology: v6e:2x2x1
jax: 0.10.0
libtpu: 0.0.40
codegen_flags: <defaults>
</compile_context>

<pallas_src>
import math
import warnings

import jax
import jax.numpy as jnp
from jax.experimental import pallas as pl
from jax.experimental.pallas import tpu as pltpu

LN_EPS = 1e-5


def _round_up(x, m):
    return ((x + m - 1) // m) * m


def _cdiv(a, b):
    return -(-a // b)


# ---------------------------------------------------------------------------
# In-kernel building blocks
# ---------------------------------------------------------------------------
def _segmented_ln_relu(y, gamma, beta, in_v, in_seg, n_value, n_policy):
    """LayerNorm + ReLU over a fused [B, D_PAD] activation.

    Lanes [0, n_value) hold the value head, [n_value, n_value+n_policy) the
    policy head, remaining lanes are zero padding.  Because the off-segment /
    padded lanes of `y` are exactly 0 (zero weight columns + zero bias), the
    policy statistics are derived from total-minus-value, halving the masked
    cross-lane reductions.  gamma is folded into the rsqrt scale.
    """
    inv_nv = 1.0 / n_value
    inv_np = 1.0 / n_policy

    sum_all = jnp.sum(y, axis=-1, keepdims=True)                       # exact: pads are 0
    sum_v = jnp.sum(jnp.where(in_v, y, 0.0), axis=-1, keepdims=True)
    mean_v = sum_v * inv_nv
    mean_p = (sum_all - sum_v) * inv_np
    mean = jnp.where(in_v, mean_v, mean_p)

    d = jnp.where(in_seg, y - mean, 0.0)                               # mask padding once
    dsq = d * d
    ssq_all = jnp.sum(dsq, axis=-1, keepdims=True)
    ssq_v = jnp.sum(jnp.where(in_v, dsq, 0.0), axis=-1, keepdims=True)
    var_v = ssq_v * inv_nv
    var_p = (ssq_all - ssq_v) * inv_np
    var = jnp.where(in_v, var_v, var_p)

    scale = jax.lax.rsqrt(var + LN_EPS) * gamma        # gamma folded into one mul
    # Padded lanes: d == 0 and gamma == beta == 0 there -> output exactly 0.
    return jnp.maximum(d * scale + beta, 0.0)


def _make_prediction_kernel(meta):
    L = meta["L"]
    hv = meta["hv"]
    hp = meta["hp"]
    d_pad = meta["d_pad"]

    def kernel(*refs):
        if L > 1:
            state_ref, w0_ref, wh_ref, vec_ref, hw_ref, hb_ref, out_ref = refs
        else:
            state_ref, w0_ref, vec_ref, hw_ref, hb_ref, out_ref = refs

        # Hoisted lane iota / segment masks: built once, reused by every layer.
        lane = jax.lax.broadcasted_iota(jnp.int32, (1, d_pad), 1)
        masks = {}
        for nv, npol in zip(hv, hp):
            if (nv, npol) not in masks:
                masks[(nv, npol)] = (lane < nv, lane < (nv + npol))

        def layer(h_bf16, w, vec, nv, npol):
            b = vec[0:1, :]
            g = vec[1:2, :]
            be = vec[2:3, :]
            y = jnp.dot(h_bf16, w, preferred_element_type=jnp.float32) + b
            in_v, in_seg = masks[(nv, npol)]
            return _segmented_ln_relu(y, g, be, in_v, in_seg, nv, npol)

        # Layer 0 contracts over the raw (un-padded) state features.
        h = layer(state_ref[...], w0_ref[...], vec_ref[0], hv[0], hp[0])
        for i in range(1, L):
            h = layer(h.astype(jnp.bfloat16), wh_ref[i - 1], vec_ref[i], hv[i], hp[i])

        # Fused output head: one matmul -> [policy_logits | value | 0s], f32 bias.
        out = jnp.dot(h.astype(jnp.bfloat16), hw_ref[...],
                      preferred_element_type=jnp.float32) + hb_ref[...]
        out_ref[...] = out.astype(out_ref.dtype)       # single lane-dense store

    return kernel


# ---------------------------------------------------------------------------
# Parameter packing (wrapper side, plain JAX)
# ---------------------------------------------------------------------------
def pack_params(state_dim, params, *, weight_dtype=jnp.bfloat16):
    """Packs per-layer params into fused slabs (bf16 weights, f32 vectors)."""
    value_mlp = params["value_mlp"]
    policy_mlp = params["policy_mlp"]
    L = len(value_mlp)
    assert L >= 1 and len(policy_mlp) == L, "fused kernel assumes equal depth"

    hv = [int(w.shape[1]) for (w, _, _, _) in value_mlp]
    hp = [int(w.shape[1]) for (w, _, _, _) in policy_mlp]

    fused_width = max(hv[i] + hp[i] for i in range(L))
    if fused_width > 256:
        # TODO(synk): fall back to per-head matmuls (or sublane-stacked heads)
        # once the fused width exceeds one MXU tile; block-diagonal fusion then
        # pays a ~2x MXU-FLOP tax through the zero off-diagonal blocks.
        warnings.warn("fused hidden width %d exceeds one MXU tile (256); "
                      "block-diagonal fusion wastes MXU FLOPs" % fused_width)

    d_pad = _round_up(max(fused_width, 128), 128)

    # Layer 0: both heads read the same raw state -> rows [0, state_dim).
    wv0, _, _, _ = value_mlp[0]
    wp0, _, _, _ = policy_mlp[0]
    w0 = jnp.zeros((state_dim, d_pad), jnp.float32)
    w0 = w0.at[:, 0:hv[0]].set(wv0)
    w0 = w0.at[:, hv[0]:hv[0] + hp[0]].set(wp0)
    w0 = w0.astype(weight_dtype)

    wh_layers, vec_layers = [], []
    for i in range(L):
        wv_i, bv_i, gv_i, ev_i = value_mlp[i]
        wp_i, bp_i, gp_i, ep_i = policy_mlp[i]

        vec = jnp.zeros((3, d_pad), jnp.float32)          # bias / gamma / beta (f32)
        vec = vec.at[0, 0:hv[i]].set(bv_i.reshape(-1))
        vec = vec.at[0, hv[i]:hv[i] + hp[i]].set(bp_i.reshape(-1))
        vec = vec.at[1, 0:hv[i]].set(gv_i.reshape(-1))
        vec = vec.at[1, hv[i]:hv[i] + hp[i]].set(gp_i.reshape(-1))
        vec = vec.at[2, 0:hv[i]].set(ev_i.reshape(-1))
        vec = vec.at[2, hv[i]:hv[i] + hp[i]].set(ep_i.reshape(-1))
        vec_layers.append(vec)

        if i >= 1:
            w = jnp.zeros((d_pad, d_pad), jnp.float32)    # block-diagonal fused weight
            w = w.at[0:hv[i - 1], 0:hv[i]].set(wv_i)
            w = w.at[hv[i - 1]:hv[i - 1] + hp[i - 1],
                     hv[i]:hv[i] + hp[i]].set(wp_i)
            wh_layers.append(w.astype(weight_dtype))

    vec_slab = jnp.stack(vec_layers)                              # [L, 3, d_pad] f32
    wh_slab = jnp.stack(wh_layers) if L > 1 else None             # [L-1, d_pad, d_pad] bf16

    wv_fc, bv_fc = params["value_fc"]
    wa, ba = params["act"]
    value_support = int(wv_fc.shape[1])
    action_space = int(wa.shape[1])
    out_pad = _round_up(action_space + value_support, 128)

    # Fused head weight: columns [0, A) = policy logits, [A, A+V) = value.
    head_w = jnp.zeros((d_pad, out_pad), jnp.float32)
    head_w = head_w.at[0:hv[-1], action_space:action_space + value_support].set(wv_fc)
    head_w = head_w.at[hv[-1]:hv[-1] + hp[-1], 0:action_space].set(wa)
    head_w = head_w.astype(weight_dtype)

    head_b = jnp.zeros((1, out_pad), jnp.float32)                 # bias kept in f32
    head_b = head_b.at[0, 0:action_space].set(ba.reshape(-1))
    head_b = head_b.at[0, action_space:action_space + value_support].set(bv_fc.reshape(-1))

    meta = dict(L=L, hv=tuple(hv), hp=tuple(hp), d_pad=d_pad, out_pad=out_pad,
                action_space=action_space, value_support=value_support,
                state_dim=state_dim)
    return (w0, wh_slab, vec_slab, head_w, head_b), meta


# ---------------------------------------------------------------------------
# Wrapper
# ---------------------------------------------------------------------------
def _device_kind():
    try:
        return jax.devices()[0].device_kind.lower()
    except Exception:
        return ""


def prediction_network_forward(state, params, *, max_batch_tile=512):
    """Runs the whole prediction network inside a single Pallas kernel.

    state:  [B, state_dim] float32
    params: dict with 'value_mlp', 'value_fc', 'policy_mlp', 'act' entries.
    Returns (policy_logits [B, action_space], value [B, value_support_size]).
    """
    B, state_dim = state.shape
    (w0, wh_slab, vec_slab, head_w, head_b), meta = pack_params(state_dim, params)
    L, d_pad, out_pad = meta["L"], meta["d_pad"], meta["out_pad"]

    kind = _device_kind()
    is_v7 = ("v7" in kind) or ("7x" in kind)
    # Chips exposing 2 TensorCores per device benefit from >=2 "parallel" steps.
    n_cores = 2 if (is_v7 or "v4" in kind or "v5p" in kind) else 1

    b8 = _round_up(B, 8)
    if n_cores > 1 and b8 > 8:
        tb = min(_round_up(_cdiv(b8, n_cores), 16), max_batch_tile)
    else:
        tb = min(b8, max_batch_tile)          # tiny batch: keep grid=(1,)

    # Generation-aware VMEM budget (v7x: 64 MiB physical; v5e/v6e: 128 MiB).
    phys_vmem = (64 << 20) if is_v7 else (128 << 20)
    budget = phys_vmem - (8 << 20)
    resident = [w0] + ([wh_slab] if wh_slab is not None else []) + [vec_slab, head_w, head_b]
    param_bytes = sum(int(x.size) * x.dtype.itemsize for x in resident)

    def _tiles_bytes(t):                      # double-buffered bf16 state + f32 out tiles
        return 2 * t * (state_dim * 2 + out_pad * 4)

    while tb > 8 and 2 * param_bytes + _tiles_bytes(tb) > budget:
        tb = max(8, (tb // 2 // 8) * 8)
    bp = _round_up(b8, tb)
    vmem_limit = int(min(budget,
                         max(32 << 20, 2 * param_bytes + _tiles_bytes(tb) + (8 << 20))))

    # State: bf16, NOT padded to d_pad (full-array lane dim); pad batch rows
    # only when the tiling requires it.
    state_bf16 = state.astype(jnp.bfloat16)
    if bp != B:
        state_in = jnp.zeros((bp, state_dim), jnp.bfloat16).at[:B, :].set(state_bf16)
    else:
        state_in = state_bf16

    kernel = _make_prediction_kernel(meta)
    operands = [state_in] + resident

    flops = int(2 * bp * (state_dim * d_pad + (L - 1) * d_pad * d_pad + d_pad * out_pad))
    bytes_accessed = int(bp * state_dim * 2 + param_bytes + bp * out_pad * 4)
    cost = pl.CostEstimate(flops=flops, transcendentals=int(bp * L),
                           bytes_accessed=bytes_accessed)

    def _build(single_buffer_params):
        def const_spec(arr):
            shape = arr.shape
            imap = lambda i, _nd=len(shape): (0,) * _nd
            if single_buffer_params:
                # Revisited every grid step (constant index) -> one DMA is
                # enough; single buffering halves the resident VMEM.
                return pl.BlockSpec(shape, imap, pipeline_mode=pl.Buffered(buffer_count=1))
            return pl.BlockSpec(shape, imap)

        in_specs = [pl.BlockSpec((tb, state_dim), lambda i: (i, 0))]   # pipelined state tile
        in_specs += [const_spec(a) for a in resident]                  # VMEM-resident params

        return pl.pallas_call(
            kernel,
            out_shape=jax.ShapeDtypeStruct((bp, out_pad), jnp.float32),
            grid=(bp // tb,),
            in_specs=in_specs,
            out_specs=pl.BlockSpec((tb, out_pad), lambda i: (i, 0)),   # lane-dense store
            compiler_params=pltpu.CompilerParams(
                dimension_semantics=("parallel",),
                vmem_limit_bytes=vmem_limit),
            cost_estimate=cost,
        )

    try:
        out = jax.block_until_ready(_build(True)(*operands))
    except Exception:
        # Fallback for JAX builds that reject BlockSpec(pipeline_mode=Buffered(1)).
        out = jax.block_until_ready(_build(False)(*operands))

    action_space = meta["action_space"]
    value_support = meta["value_support"]
    policy_logits = out[:B, :action_space]
    value = out[:B, action_space:action_space + value_support]
    return policy_logits, value


# ---------------------------------------------------------------------------
# Deterministic parameter construction (mirrors the torch __init__ shapes)
# ---------------------------------------------------------------------------
def _init_linear(key, fan_in, fan_out):
    # orthogonal init with gain sqrt(2), zero bias (as in init_fc)
    w = jax.nn.initializers.orthogonal(scale=math.sqrt(2.0))(
        key, (fan_in, fan_out), jnp.float32)
    b = jnp.zeros((1, fan_out), jnp.float32)
    return w, b


def make_params(key, state_dim, value_fc_layers, policy_fc_layers,
                value_support_size, action_space, init_zero=False):
    params = {"value_mlp": [], "policy_mlp": []}

    dims = [state_dim] + list(value_fc_layers)
    for i in range(len(value_fc_layers)):
        key, sub = jax.random.split(key)
        w, b = _init_linear(sub, dims[i], dims[i + 1])
        g = jnp.ones((1, dims[i + 1]), jnp.float32)     # LayerNorm gamma
        be = jnp.zeros((1, dims[i + 1]), jnp.float32)   # LayerNorm beta
        params["value_mlp"].append((w, b, g, be))

    key, sub = jax.random.split(key)
    wv, bv = _init_linear(sub, value_fc_layers[-1], value_support_size)
    if init_zero:
        wv = jnp.zeros_like(wv)
        bv = jnp.zeros_like(bv)
    params["value_fc"] = (wv, bv)

    dims = [state_dim] + list(policy_fc_layers)
    for i in range(len(policy_fc_layers)):
        key, sub = jax.random.split(key)
        w, b = _init_linear(sub, dims[i], dims[i + 1])
        g = jnp.ones((1, dims[i + 1]), jnp.float32)
        be = jnp.zeros((1, dims[i + 1]), jnp.float32)
        params["policy_mlp"].append((w, b, g, be))

    key, sub = jax.random.split(key)
    wa, ba = _init_linear(sub, policy_fc_layers[-1], action_space)
    params["act"] = (wa, ba)
    return params


# ---------------------------------------------------------------------------
# Pure-JAX references (unfused, for correctness checks)
# ---------------------------------------------------------------------------
def _ln(x, g, b):
    m = jnp.mean(x, axis=-1, keepdims=True)
    v = jnp.mean((x - m) ** 2, axis=-1, keepdims=True)
    return (x - m) * jax.lax.rsqrt(v + LN_EPS) * g + b


def _ref_forward_f32(state, params):
    v = state
    for (w, b, g, be) in params["value_mlp"]:
        v = jnp.maximum(_ln(v @ w + b, g, be), 0.0)
    value = v @ params["value_fc"][0] + params["value_fc"][1]

    p = state
    for (w, b, g, be) in params["policy_mlp"]:
        p = jnp.maximum(_ln(p @ w + b, g, be), 0.0)
    logits = p @ params["act"][0] + params["act"][1]
    return logits, value


def _ref_forward_bf16(state, params):
    """Mimics the kernel's bf16 matmul inputs with f32 accumulation / LN."""
    def mm(x, w):
        return jnp.dot(x.astype(jnp.bfloat16), w.astype(jnp.bfloat16),
                       preferred_element_type=jnp.float32)

    v = state
    for (w, b, g, be) in params["value_mlp"]:
        v = jnp.maximum(_ln(mm(v, w) + b, g, be), 0.0)
    value = mm(v, params["value_fc"][0]) + params["value_fc"][1]

    p = state
    for (w, b, g, be) in params["policy_mlp"]:
        p = jnp.maximum(_ln(mm(p, w) + b, g, be), 0.0)
    logits = mm(p, params["act"][0]) + params["act"][1]
    return logits, value


# ---------------------------------------------------------------------------
if __name__ == "__main__":
    B = 8
    state_dim = 32
    value_fc_layers = [32, 32]
    policy_fc_layers = [32, 32]
    value_support_size = 21
    action_space = 6

    key = jax.random.PRNGKey(0)
    key, pkey, skey = jax.random.split(key, 3)
    params = make_params(pkey, state_dim, value_fc_layers, policy_fc_layers,
                         value_support_size, action_space, init_zero=False)
    state = jax.random.normal(skey, (B, state_dim), jnp.float32)

    policy_logits, value = prediction_network_forward(state, params)
    jax.block_until_ready((policy_logits, value))

    assert policy_logits.shape == (B, action_space)
    assert value.shape == (B, value_support_size)

    # Tight check vs a reference that mimics the kernel's bf16 matmul inputs.
    ref_logits16, ref_value16 = _ref_forward_bf16(state, params)
    assert jnp.allclose(policy_logits, ref_logits16, atol=1e-2, rtol=1e-2), \
        float(jnp.max(jnp.abs(policy_logits - ref_logits16)))
    assert jnp.allclose(value, ref_value16, atol=1e-2, rtol=1e-2), \
        float(jnp.max(jnp.abs(value - ref_value16)))

    # Loose sanity check vs the full-f32 reference (bf16 weights/activations
    # introduce ~0.4% relative rounding per matmul).
    ref_logits, ref_value = _ref_forward_f32(state, params)
    assert jnp.allclose(policy_logits, ref_logits, atol=2.5e-1, rtol=5e-2)
    assert jnp.allclose(value, ref_value, atol=2.5e-1, rtol=5e-2)

    print("KERNEL_OK")
</pallas_src>

<mosaic_0001>
module attributes {stable_mosaic.version = 11 : i64} {
  func.func @kernel(%arg0: i32, %arg1: memref<8x32xbf16, #tpu.memory_space<vmem>>, %arg2: memref<32x128xbf16, #tpu.memory_space<vmem>>, %arg3: memref<1x128x128xbf16, #tpu.memory_space<vmem>>, %arg4: memref<2x3x128xf32, #tpu.memory_space<vmem>>, %arg5: memref<128x128xbf16, #tpu.memory_space<vmem>>, %arg6: memref<1x128xf32, #tpu.memory_space<vmem>>, %arg7: memref<8x128xf32, #tpu.memory_space<vmem>>) attributes {dimension_semantics = [#tpu.dimension_semantics<parallel>], iteration_bounds = array<i64: 1>, scalar_prefetch = 0 : i64, scratch_operands = 0 : i64, tpu.core_type = #tpu.core_type<tc>, window_params = [{transform_indices = @transform_0, window_bounds = array<i64: 8, 32>}, {pipeline_mode = #tpu.pipeline_mode<synchronous>, transform_indices = @transform_1, window_bounds = array<i64: 32, 128>}, {pipeline_mode = #tpu.pipeline_mode<synchronous>, transform_indices = @transform_2, window_bounds = array<i64: 1, 128, 128>}, {pipeline_mode = #tpu.pipeline_mode<synchronous>, transform_indices = @transform_3, window_bounds = array<i64: 2, 3, 128>}, {pipeline_mode = #tpu.pipeline_mode<synchronous>, transform_indices = @transform_4, window_bounds = array<i64: 128, 128>}, {pipeline_mode = #tpu.pipeline_mode<synchronous>, transform_indices = @transform_5, window_bounds = array<i64: 1, 128>}, {transform_indices = @transform_6, window_bounds = array<i64: 8, 128>}]} {
    %0 = tpu.iota {dimensions = array<i32: 1>} : vector<1x128xi32>
    %c32_i32 = arith.constant 32 : i32
    %1 = vector.broadcast %c32_i32 : i32 to vector<1x128xi32>
    %2 = arith.cmpi slt, %0, %1 : vector<1x128xi32>
    %c64_i32 = arith.constant 64 : i32
    %3 = vector.broadcast %c64_i32 : i32 to vector<1x128xi32>
    %4 = arith.cmpi slt, %0, %3 : vector<1x128xi32>
    %c0 = arith.constant 0 : index
    %c0_0 = arith.constant 0 : index
    %5 = vector.load %arg1[%c0, %c0_0] : memref<8x32xbf16, #tpu.memory_space<vmem>>, vector<8x32xbf16>
    %c0_1 = arith.constant 0 : index
    %c0_2 = arith.constant 0 : index
    %6 = vector.load %arg2[%c0_1, %c0_2] : memref<32x128xbf16, #tpu.memory_space<vmem>>, vector<32x128xbf16>
    %c0_3 = arith.constant 0 : index
    %c0_4 = arith.constant 0 : index
    %c0_5 = arith.constant 0 : index
    %7 = vector.load %arg4[%c0_3, %c0_4, %c0_5] : memref<2x3x128xf32, #tpu.memory_space<vmem>>, vector<1x3x128xf32>
    %8 = vector.shape_cast %7 : vector<1x3x128xf32> to vector<3x128xf32>
    %9 = vector.extract_strided_slice %8 {offsets = [0, 0], sizes = [1, 128], strides = [1, 1]} : vector<3x128xf32> to vector<1x128xf32>
    %10 = vector.extract_strided_slice %8 {offsets = [1, 0], sizes = [1, 128], strides = [1, 1]} : vector<3x128xf32> to vector<1x128xf32>
    %11 = vector.extract_strided_slice %8 {offsets = [2, 0], sizes = [1, 128], strides = [1, 1]} : vector<3x128xf32> to vector<1x128xf32>
    %cst = arith.constant dense<0.000000e+00> : vector<8x128xf32>
    %12 = tpu.matmul %5, %6, %cst {dimension_numbers = #tpu.dot_dimension_numbers<[1], [0], [0], [1], [0, 0, 1, 1], [], []>} : vector<8x32xbf16>, vector<32x128xbf16>, vector<8x128xf32> -> vector<8x128xf32>
    %13 = vector.broadcast %9 : vector<1x128xf32> to vector<8x128xf32>
    %14 = arith.addf %12, %13 : vector<8x128xf32>
    %cst_6 = arith.constant dense<0.000000e+00> : vector<8xf32>
    %15 = vector.multi_reduction <add>, %14, %cst_6 [1] : vector<8x128xf32> to vector<8xf32>
    %16 = vector.shape_cast %15 : vector<8xf32> to vector<8x1xf32>
    %cst_7 = arith.constant 0.000000e+00 : f32
    %17 = vector.shape_cast %2 : vector<1x128xi1> to vector<1x128xi1>
    %18 = vector.broadcast %17 : vector<1x128xi1> to vector<8x128xi1>
    %19 = vector.broadcast %cst_7 : f32 to vector<8x128xf32>
    %20 = arith.select %18, %14, %19 : vector<8x128xi1>, vector<8x128xf32>
    %cst_8 = arith.constant dense<0.000000e+00> : vector<8xf32>
    %21 = vector.multi_reduction <add>, %20, %cst_8 [1] : vector<8x128xf32> to vector<8xf32>
    %22 = vector.shape_cast %21 : vector<8xf32> to vector<8x1xf32>
    %cst_9 = arith.constant 3.125000e-02 : f32
    %23 = vector.broadcast %cst_9 : f32 to vector<8x1xf32>
    %24 = arith.mulf %22, %23 : vector<8x1xf32>
    %25 = arith.subf %16, %22 : vector<8x1xf32>
    %cst_10 = arith.constant 3.125000e-02 : f32
    %26 = vector.broadcast %cst_10 : f32 to vector<8x1xf32>
    %27 = arith.mulf %25, %26 : vector<8x1xf32>
    %28 = vector.shape_cast %2 : vector<1x128xi1> to vector<1x128xi1>
    %29 = vector.broadcast %28 : vector<1x128xi1> to vector<8x128xi1>
    %30 = vector.shape_cast %24 : vector<8x1xf32> to vector<8x1xf32>
    %31 = vector.broadcast %30 : vector<8x1xf32> to vector<8x128xf32>
    %32 = vector.shape_cast %27 : vector<8x1xf32> to vector<8x1xf32>
    %33 = vector.broadcast %32 : vector<8x1xf32> to vector<8x128xf32>
    %34 = arith.select %29, %31, %33 : vector<8x128xi1>, vector<8x128xf32>
    %35 = arith.subf %14, %34 : vector<8x128xf32>
    %cst_11 = arith.constant 0.000000e+00 : f32
    %36 = vector.shape_cast %4 : vector<1x128xi1> to vector<1x128xi1>
    %37 = vector.broadcast %36 : vector<1x128xi1> to vector<8x128xi1>
    %38 = vector.broadcast %cst_11 : f32 to vector<8x128xf32>
    %39 = arith.select %37, %35, %38 : vector<8x128xi1>, vector<8x128xf32>
    %40 = arith.mulf %39, %39 : vector<8x128xf32>
    %cst_12 = arith.constant dense<0.000000e+00> : vector<8xf32>
    %41 = vector.multi_reduction <add>, %40, %cst_12 [1] : vector<8x128xf32> to vector<8xf32>
    %42 = vector.shape_cast %41 : vector<8xf32> to vector<8x1xf32>
    %cst_13 = arith.constant 0.000000e+00 : f32
    %43 = vector.shape_cast %2 : vector<1x128xi1> to vector<1x128xi1>
    %44 = vector.broadcast %43 : vector<1x128xi1> to vector<8x128xi1>
    %45 = vector.broadcast %cst_13 : f32 to vector<8x128xf32>
    %46 = arith.select %44, %40, %45 : vector<8x128xi1>, vector<8x128xf32>
    %cst_14 = arith.constant dense<0.000000e+00> : vector<8xf32>
    %47 = vector.multi_reduction <add>, %46, %cst_14 [1] : vector<8x128xf32> to vector<8xf32>
    %48 = vector.shape_cast %47 : vector<8xf32> to vector<8x1xf32>
    %cst_15 = arith.constant 3.125000e-02 : f32
    %49 = vector.broadcast %cst_15 : f32 to vector<8x1xf32>
    %50 = arith.mulf %48, %49 : vector<8x1xf32>
    %51 = arith.subf %42, %48 : vector<8x1xf32>
    %cst_16 = arith.constant 3.125000e-02 : f32
    %52 = vector.broadcast %cst_16 : f32 to vector<8x1xf32>
    %53 = arith.mulf %51, %52 : vector<8x1xf32>
    %54 = vector.shape_cast %2 : vector<1x128xi1> to vector<1x128xi1>
    %55 = vector.broadcast %54 : vector<1x128xi1> to vector<8x128xi1>
    %56 = vector.shape_cast %50 : vector<8x1xf32> to vector<8x1xf32>
    %57 = vector.broadcast %56 : vector<8x1xf32> to vector<8x128xf32>
    %58 = vector.shape_cast %53 : vector<8x1xf32> to vector<8x1xf32>
    %59 = vector.broadcast %58 : vector<8x1xf32> to vector<8x128xf32>
    %60 = arith.select %55, %57, %59 : vector<8x128xi1>, vector<8x128xf32>
    %cst_17 = arith.constant 9.99999974E-6 : f32
    %61 = vector.broadcast %cst_17 : f32 to vector<8x128xf32>
    %62 = arith.addf %60, %61 : vector<8x128xf32>
    %63 = math.rsqrt %62 : vector<8x128xf32>
    %64 = vector.broadcast %10 : vector<1x128xf32> to vector<8x128xf32>
    %65 = arith.mulf %63, %64 : vector<8x128xf32>
    %66 = arith.mulf %39, %65 : vector<8x128xf32>
    %67 = vector.broadcast %11 : vector<1x128xf32> to vector<8x128xf32>
    %68 = arith.addf %66, %67 : vector<8x128xf32>
    %cst_18 = arith.constant 0.000000e+00 : f32
    %69 = vector.broadcast %cst_18 : f32 to vector<8x128xf32>
    %70 = arith.maximumf %68, %69 : vector<8x128xf32>
    %71 = arith.truncf %70 : vector<8x128xf32> to vector<8x128xbf16>
    %c0_19 = arith.constant 0 : index
    %c0_20 = arith.constant 0 : index
    %c0_21 = arith.constant 0 : index
    %72 = vector.load %arg3[%c0_19, %c0_20, %c0_21] : memref<1x128x128xbf16, #tpu.memory_space<vmem>>, vector<1x128x128xbf16>
    %73 = vector.shape_cast %72 : vector<1x128x128xbf16> to vector<128x128xbf16>
    %c1 = arith.constant 1 : index
    %c0_22 = arith.constant 0 : index
    %c0_23 = arith.constant 0 : index
    %74 = vector.load %arg4[%c1, %c0_22, %c0_23] : memref<2x3x128xf32, #tpu.memory_space<vmem>>, vector<1x3x128xf32>
    %75 = vector.shape_cast %74 : vector<1x3x128xf32> to vector<3x128xf32>
    %76 = vector.extract_strided_slice %75 {offsets = [0, 0], sizes = [1, 128], strides = [1, 1]} : vector<3x128xf32> to vector<1x128xf32>
    %77 = vector.extract_strided_slice %75 {offsets = [1, 0], sizes = [1, 128], strides = [1, 1]} : vector<3x128xf32> to vector<1x128xf32>
    %78 = vector.extract_strided_slice %75 {offsets = [2, 0], sizes = [1, 128], strides = [1, 1]} : vector<3x128xf32> to vector<1x128xf32>
    %cst_24 = arith.constant dense<0.000000e+00> : vector<8x128xf32>
    %79 = tpu.matmul %71, %73, %cst_24 {dimension_numbers = #tpu.dot_dimension_numbers<[1], [0], [0], [1], [0, 0, 1, 1], [], []>} : vector<8x128xbf16>, vector<128x128xbf16>, vector<8x128xf32> -> vector<8x128xf32>
    %80 = vector.broadcast %76 : vector<1x128xf32> to vector<8x128xf32>
    %81 = arith.addf %79, %80 : vector<8x128xf32>
    %cst_25 = arith.constant dense<0.000000e+00> : vector<8xf32>
    %82 = vector.multi_reduction <add>, %81, %cst_25 [1] : vector<8x128xf32> to vector<8xf32>
    %83 = vector.shape_cast %82 : vector<8xf32> to vector<8x1xf32>
    %cst_26 = arith.constant 0.000000e+00 : f32
    %84 = vector.shape_cast %2 : vector<1x128xi1> to vector<1x128xi1>
    %85 = vector.broadcast %84 : vector<1x128xi1> to vector<8x128xi1>
    %86 = vector.broadcast %cst_26 : f32 to vector<8x128xf32>
    %87 = arith.select %85, %81, %86 : vector<8x128xi1>, vector<8x128xf32>
    %cst_27 = arith.constant dense<0.000000e+00> : vector<8xf32>
    %88 = vector.multi_reduction <add>, %87, %cst_27 [1] : vector<8x128xf32> to vector<8xf32>
    %89 = vector.shape_cast %88 : vector<8xf32> to vector<8x1xf32>
    %cst_28 = arith.constant 3.125000e-02 : f32
    %90 = vector.broadcast %cst_28 : f32 to vector<8x1xf32>
    %91 = arith.mulf %89, %90 : vector<8x1xf32>
    %92 = arith.subf %83, %89 : vector<8x1xf32>
    %cst_29 = arith.constant 3.125000e-02 : f32
    %93 = vector.broadcast %cst_29 : f32 to vector<8x1xf32>
    %94 = arith.mulf %92, %93 : vector<8x1xf32>
    %95 = vector.shape_cast %2 : vector<1x128xi1> to vector<1x128xi1>
    %96 = vector.broadcast %95 : vector<1x128xi1> to vector<8x128xi1>
    %97 = vector.shape_cast %91 : vector<8x1xf32> to vector<8x1xf32>
    %98 = vector.broadcast %97 : vector<8x1xf32> to vector<8x128xf32>
    %99 = vector.shape_cast %94 : vector<8x1xf32> to vector<8x1xf32>
    %100 = vector.broadcast %99 : vector<8x1xf32> to vector<8x128xf32>
    %101 = arith.select %96, %98, %100 : vector<8x128xi1>, vector<8x128xf32>
    %102 = arith.subf %81, %101 : vector<8x128xf32>
    %cst_30 = arith.constant 0.000000e+00 : f32
    %103 = vector.shape_cast %4 : vector<1x128xi1> to vector<1x128xi1>
    %104 = vector.broadcast %103 : vector<1x128xi1> to vector<8x128xi1>
    %105 = vector.broadcast %cst_30 : f32 to vector<8x128xf32>
    %106 = arith.select %104, %102, %105 : vector<8x128xi1>, vector<8x128xf32>
    %107 = arith.mulf %106, %106 : vector<8x128xf32>
    %cst_31 = arith.constant dense<0.000000e+00> : vector<8xf32>
    %108 = vector.multi_reduction <add>, %107, %cst_31 [1] : vector<8x128xf32> to vector<8xf32>
    %109 = vector.shape_cast %108 : vector<8xf32> to vector<8x1xf32>
    %cst_32 = arith.constant 0.000000e+00 : f32
    %110 = vector.shape_cast %2 : vector<1x128xi1> to vector<1x128xi1>
    %111 = vector.broadcast %110 : vector<1x128xi1> to vector<8x128xi1>
    %112 = vector.broadcast %cst_32 : f32 to vector<8x128xf32>
    %113 = arith.select %111, %107, %112 : vector<8x128xi1>, vector<8x128xf32>
    %cst_33 = arith.constant dense<0.000000e+00> : vector<8xf32>
    %114 = vector.multi_reduction <add>, %113, %cst_33 [1] : vector<8x128xf32> to vector<8xf32>
    %115 = vector.shape_cast %114 : vector<8xf32> to vector<8x1xf32>
    %cst_34 = arith.constant 3.125000e-02 : f32
    %116 = vector.broadcast %cst_34 : f32 to vector<8x1xf32>
    %117 = arith.mulf %115, %116 : vector<8x1xf32>
    %118 = arith.subf %109, %115 : vector<8x1xf32>
    %cst_35 = arith.constant 3.125000e-02 : f32
    %119 = vector.broadcast %cst_35 : f32 to vector<8x1xf32>
    %120 = arith.mulf %118, %119 : vector<8x1xf32>
    %121 = vector.shape_cast %2 : vector<1x128xi1> to vector<1x128xi1>
    %122 = vector.broadcast %121 : vector<1x128xi1> to vector<8x128xi1>
    %123 = vector.shape_cast %117 : vector<8x1xf32> to vector<8x1xf32>
    %124 = vector.broadcast %123 : vector<8x1xf32> to vector<8x128xf32>
    %125 = vector.shape_cast %120 : vector<8x1xf32> to vector<8x1xf32>
    %126 = vector.broadcast %125 : vector<8x1xf32> to vector<8x128xf32>
    %127 = arith.select %122, %124, %126 : vector<8x128xi1>, vector<8x128xf32>
    %cst_36 = arith.constant 9.99999974E-6 : f32
    %128 = vector.broadcast %cst_36 : f32 to vector<8x128xf32>
    %129 = arith.addf %127, %128 : vector<8x128xf32>
    %130 = math.rsqrt %129 : vector<8x128xf32>
    %131 = vector.broadcast %77 : vector<1x128xf32> to vector<8x128xf32>
    %132 = arith.mulf %130, %131 : vector<8x128xf32>
    %133 = arith.mulf %106, %132 : vector<8x128xf32>
    %134 = vector.broadcast %78 : vector<1x128xf32> to vector<8x128xf32>
    %135 = arith.addf %133, %134 : vector<8x128xf32>
    %cst_37 = arith.constant 0.000000e+00 : f32
    %136 = vector.broadcast %cst_37 : f32 to vector<8x128xf32>
    %137 = arith.maximumf %135, %136 : vector<8x128xf32>
    %138 = arith.truncf %137 : vector<8x128xf32> to vector<8x128xbf16>
    %c0_38 = arith.constant 0 : index
    %c0_39 = arith.constant 0 : index
    %139 = vector.load %arg5[%c0_38, %c0_39] : memref<128x128xbf16, #tpu.memory_space<vmem>>, vector<128x128xbf16>
    %cst_40 = arith.constant dense<0.000000e+00> : vector<8x128xf32>
    %140 = tpu.matmul %138, %139, %cst_40 {dimension_numbers = #tpu.dot_dimension_numbers<[1], [0], [0], [1], [0, 0, 1, 1], [], []>} : vector<8x128xbf16>, vector<128x128xbf16>, vector<8x128xf32> -> vector<8x128xf32>
    %c0_41 = arith.constant 0 : index
    %c0_42 = arith.constant 0 : index
    %141 = vector.load %arg6[%c0_41, %c0_42] : memref<1x128xf32, #tpu.memory_space<vmem>>, vector<1x128xf32>
    %142 = vector.broadcast %141 : vector<1x128xf32> to vector<8x128xf32>
    %143 = arith.addf %140, %142 : vector<8x128xf32>
    %c0_43 = arith.constant 0 : index
    %c0_44 = arith.constant 0 : index
    %144 = vector.load %arg7[%c0_43, %c0_44] : memref<8x128xf32, #tpu.memory_space<vmem>>, vector<8x128xf32>
    tpu.vector_store %arg7[%c0_43, %c0_44], %143 {strides = array<i32>} : memref<8x128xf32, #tpu.memory_space<vmem>>, vector<8x128xf32>,
    return
  }
  func.func @transform_0(%arg0: i32) -> (i32, i32) {
    %c0_i32 = arith.constant 0 : i32
    %c0_i32_0 = arith.constant 0 : i32
    return %arg0, %c0_i32 : i32, i32
  }
  func.func @transform_1(%arg0: i32) -> (i32, i32) {
    %c0_i32 = arith.constant 0 : i32
    %c0_i32_0 = arith.constant 0 : i32
    %c0_i32_1 = arith.constant 0 : i32
    return %c0_i32, %c0_i32_0 : i32, i32
  }
  func.func @transform_2(%arg0: i32) -> (i32, i32, i32) {
    %c0_i32 = arith.constant 0 : i32
    %c0_i32_0 = arith.constant 0 : i32
    %c0_i32_1 = arith.constant 0 : i32
    %c0_i32_2 = arith.constant 0 : i32
    return %c0_i32, %c0_i32_0, %c0_i32_1 : i32, i32, i32
  }
  func.func @transform_3(%arg0: i32) -> (i32, i32, i32) {
    %c0_i32 = arith.constant 0 : i32
    %c0_i32_0 = arith.constant 0 : i32
    %c0_i32_1 = arith.constant 0 : i32
    %c0_i32_2 = arith.constant 0 : i32
    return %c0_i32, %c0_i32_0, %c0_i32_1 : i32, i32, i32
  }
  func.func @transform_4(%arg0: i32) -> (i32, i32) {
    %c0_i32 = arith.constant 0 : i32
    %c0_i32_0 = arith.constant 0 : i32
    %c0_i32_1 = arith.constant 0 : i32
    return %c0_i32, %c0_i32_0 : i32, i32
  }
  func.func @transform_5(%arg0: i32) -> (i32, i32) {
    %c0_i32 = arith.constant 0 : i32
    %c0_i32_0 = arith.constant 0 : i32
    %c0_i32_1 = arith.constant 0 : i32
    return %c0_i32, %c0_i32_0 : i32, i32
  }
  func.func @transform_6(%arg0: i32) -> (i32, i32) {
    %c0_i32 = arith.constant 0 : i32
    %c0_i32_0 = arith.constant 0 : i32
    return %arg0, %c0_i32 : i32, i32
  }
}

module attributes {stable_mosaic.version = 11 : i64} {
  func.func @kernel(%arg0: i32, %arg1: memref<8x32xbf16, #tpu.memory_space<vmem>>, %arg2: memref<32x128xbf16, #tpu.memory_space<vmem>>, %arg3: memref<1x128x128xbf16, #tpu.memory_space<vmem>>, %arg4: memref<2x3x128xf32, #tpu.memory_space<vmem>>, %arg5: memref<128x128xbf16, #tpu.memory_space<vmem>>, %arg6: memref<1x128xf32, #tpu.memory_space<vmem>>, %arg7: memref<8x128xf32, #tpu.memory_space<vmem>>) attributes {dimension_semantics = [#tpu.dimension_semantics<parallel>], iteration_bounds = array<i64: 1>, scalar_prefetch = 0 : i64, scratch_operands = 0 : i64, tpu.core_type = #tpu.core_type<tc>, window_params = [{transform_indices = @transform_0, window_bounds = array<i64: 8, 32>}, {pipeline_mode = #tpu.pipeline_mode<synchronous>, transform_indices = @transform_1, window_bounds = array<i64: 32, 128>}, {pipeline_mode = #tpu.pipeline_mode<synchronous>, transform_indices = @transform_2, window_bounds = array<i64: 1, 128, 128>}, {pipeline_mode = #tpu.pipeline_mode<synchronous>, transform_indices = @transform_3, window_bounds = array<i64: 2, 3, 128>}, {pipeline_mode = #tpu.pipeline_mode<synchronous>, transform_indices = @transform_4, window_bounds = array<i64: 128, 128>}, {pipeline_mode = #tpu.pipeline_mode<synchronous>, transform_indices = @transform_5, window_bounds = array<i64: 1, 128>}, {transform_indices = @transform_6, window_bounds = array<i64: 8, 128>}]} {
    %0 = tpu.iota {dimensions = array<i32: 1>} : vector<1x128xi32>
    %c32_i32 = arith.constant 32 : i32
    %1 = vector.broadcast %c32_i32 : i32 to vector<1x128xi32>
    %2 = arith.cmpi slt, %0, %1 : vector<1x128xi32>
    %c64_i32 = arith.constant 64 : i32
    %3 = vector.broadcast %c64_i32 : i32 to vector<1x128xi32>
    %4 = arith.cmpi slt, %0, %3 : vector<1x128xi32>
    %c0 = arith.constant 0 : index
    %c0_0 = arith.constant 0 : index
    %5 = vector.load %arg1[%c0, %c0_0] : memref<8x32xbf16, #tpu.memory_space<vmem>>, vector<8x32xbf16>
    %c0_1 = arith.constant 0 : index
    %c0_2 = arith.constant 0 : index
    %6 = vector.load %arg2[%c0_1, %c0_2] : memref<32x128xbf16, #tpu.memory_space<vmem>>, vector<32x128xbf16>
    %c0_3 = arith.constant 0 : index
    %c0_4 = arith.constant 0 : index
    %c0_5 = arith.constant 0 : index
    %7 = vector.load %arg4[%c0_3, %c0_4, %c0_5] : memref<2x3x128xf32, #tpu.memory_space<vmem>>, vector<1x3x128xf32>
    %8 = vector.shape_cast %7 : vector<1x3x128xf32> to vector<3x128xf32>
    %9 = vector.extract_strided_slice %8 {offsets = [0, 0], sizes = [1, 128], strides = [1, 1]} : vector<3x128xf32> to vector<1x128xf32>
    %10 = vector.extract_strided_slice %8 {offsets = [1, 0], sizes = [1, 128], strides = [1, 1]} : vector<3x128xf32> to vector<1x128xf32>
    %11 = vector.extract_strided_slice %8 {offsets = [2, 0], sizes = [1, 128], strides = [1, 1]} : vector<3x128xf32> to vector<1x128xf32>
    %cst = arith.constant dense<0.000000e+00> : vector<8x128xf32>
    %12 = tpu.matmul %5, %6, %cst {dimension_numbers = #tpu.dot_dimension_numbers<[1], [0], [0], [1], [0, 0, 1, 1], [], []>} : vector<8x32xbf16>, vector<32x128xbf16>, vector<8x128xf32> -> vector<8x128xf32>
    %13 = vector.broadcast %9 : vector<1x128xf32> to vector<8x128xf32>
    %14 = arith.addf %12, %13 : vector<8x128xf32>
    %cst_6 = arith.constant dense<0.000000e+00> : vector<8xf32>
    %15 = vector.multi_reduction <add>, %14, %cst_6 [1] : vector<8x128xf32> to vector<8xf32>
    %16 = vector.shape_cast %15 : vector<8xf32> to vector<8x1xf32>
    %cst_7 = arith.constant 0.000000e+00 : f32
    %17 = vector.shape_cast %2 : vector<1x128xi1> to vector<1x128xi1>
    %18 = vector.broadcast %17 : vector<1x128xi1> to vector<8x128xi1>
    %19 = vector.broadcast %cst_7 : f32 to vector<8x128xf32>
    %20 = arith.select %18, %14, %19 : vector<8x128xi1>, vector<8x128xf32>
    %cst_8 = arith.constant dense<0.000000e+00> : vector<8xf32>
    %21 = vector.multi_reduction <add>, %20, %cst_8 [1] : vector<8x128xf32> to vector<8xf32>
    %22 = vector.shape_cast %21 : vector<8xf32> to vector<8x1xf32>
    %cst_9 = arith.constant 3.125000e-02 : f32
    %23 = vector.broadcast %cst_9 : f32 to vector<8x1xf32>
    %24 = arith.mulf %22, %23 : vector<8x1xf32>
    %25 = arith.subf %16, %22 : vector<8x1xf32>
    %cst_10 = arith.constant 3.125000e-02 : f32
    %26 = vector.broadcast %cst_10 : f32 to vector<8x1xf32>
    %27 = arith.mulf %25, %26 : vector<8x1xf32>
    %28 = vector.shape_cast %2 : vector<1x128xi1> to vector<1x128xi1>
    %29 = vector.broadcast %28 : vector<1x128xi1> to vector<8x128xi1>
    %30 = vector.shape_cast %24 : vector<8x1xf32> to vector<8x1xf32>
    %31 = vector.broadcast %30 : vector<8x1xf32> to vector<8x128xf32>
    %32 = vector.shape_cast %27 : vector<8x1xf32> to vector<8x1xf32>
    %33 = vector.broadcast %32 : vector<8x1xf32> to vector<8x128xf32>
    %34 = arith.select %29, %31, %33 : vector<8x128xi1>, vector<8x128xf32>
    %35 = arith.subf %14, %34 : vector<8x128xf32>
    %cst_11 = arith.constant 0.000000e+00 : f32
    %36 = vector.shape_cast %4 : vector<1x128xi1> to vector<1x128xi1>
    %37 = vector.broadcast %36 : vector<1x128xi1> to vector<8x128xi1>
    %38 = vector.broadcast %cst_11 : f32 to vector<8x128xf32>
    %39 = arith.select %37, %35, %38 : vector<8x128xi1>, vector<8x128xf32>
    %40 = arith.mulf %39, %39 : vector<8x128xf32>
    %cst_12 = arith.constant dense<0.000000e+00> : vector<8xf32>
    %41 = vector.multi_reduction <add>, %40, %cst_12 [1] : vector<8x128xf32> to vector<8xf32>
    %42 = vector.shape_cast %41 : vector<8xf32> to vector<8x1xf32>
    %cst_13 = arith.constant 0.000000e+00 : f32
    %43 = vector.shape_cast %2 : vector<1x128xi1> to vector<1x128xi1>
    %44 = vector.broadcast %43 : vector<1x128xi1> to vector<8x128xi1>
    %45 = vector.broadcast %cst_13 : f32 to vector<8x128xf32>
    %46 = arith.select %44, %40, %45 : vector<8x128xi1>, vector<8x128xf32>
    %cst_14 = arith.constant dense<0.000000e+00> : vector<8xf32>
    %47 = vector.multi_reduction <add>, %46, %cst_14 [1] : vector<8x128xf32> to vector<8xf32>
    %48 = vector.shape_cast %47 : vector<8xf32> to vector<8x1xf32>
    %cst_15 = arith.constant 3.125000e-02 : f32
    %49 = vector.broadcast %cst_15 : f32 to vector<8x1xf32>
    %50 = arith.mulf %48, %49 : vector<8x1xf32>
    %51 = arith.subf %42, %48 : vector<8x1xf32>
    %cst_16 = arith.constant 3.125000e-02 : f32
    %52 = vector.broadcast %cst_16 : f32 to vector<8x1xf32>
    %53 = arith.mulf %51, %52 : vector<8x1xf32>
    %54 = vector.shape_cast %2 : vector<1x128xi1> to vector<1x128xi1>
    %55 = vector.broadcast %54 : vector<1x128xi1> to vector<8x128xi1>
    %56 = vector.shape_cast %50 : vector<8x1xf32> to vector<8x1xf32>
    %57 = vector.broadcast %56 : vector<8x1xf32> to vector<8x128xf32>
    %58 = vector.shape_cast %53 : vector<8x1xf32> to vector<8x1xf32>
    %59 = vector.broadcast %58 : vector<8x1xf32> to vector<8x128xf32>
    %60 = arith.select %55, %57, %59 : vector<8x128xi1>, vector<8x128xf32>
    %cst_17 = arith.constant 9.99999974E-6 : f32
    %61 = vector.broadcast %cst_17 : f32 to vector<8x128xf32>
    %62 = arith.addf %60, %61 : vector<8x128xf32>
    %63 = math.rsqrt %62 : vector<8x128xf32>
    %64 = vector.broadcast %10 : vector<1x128xf32> to vector<8x128xf32>
    %65 = arith.mulf %63, %64 : vector<8x128xf32>
    %66 = arith.mulf %39, %65 : vector<8x128xf32>
    %67 = vector.broadcast %11 : vector<1x128xf32> to vector<8x128xf32>
    %68 = arith.addf %66, %67 : vector<8x128xf32>
    %cst_18 = arith.constant 0.000000e+00 : f32
    %69 = vector.broadcast %cst_18 : f32 to vector<8x128xf32>
    %70 = arith.maximumf %68, %69 : vector<8x128xf32>
    %71 = arith.truncf %70 : vector<8x128xf32> to vector<8x128xbf16>
    %c0_19 = arith.constant 0 : index
    %c0_20 = arith.constant 0 : index
    %c0_21 = arith.constant 0 : index
    %72 = vector.load %arg3[%c0_19, %c0_20, %c0_21] : memref<1x128x128xbf16, #tpu.memory_space<vmem>>, vector<1x128x128xbf16>
    %73 = vector.shape_cast %72 : vector<1x128x128xbf16> to vector<128x128xbf16>
    %c1 = arith.constant 1 : index
    %c0_22 = arith.constant 0 : index
    %c0_23 = arith.constant 0 : index
    %74 = vector.load %arg4[%c1, %c0_22, %c0_23] : memref<2x3x128xf32, #tpu.memory_space<vmem>>, vector<1x3x128xf32>
    %75 = vector.shape_cast %74 : vector<1x3x128xf32> to vector<3x128xf32>
    %76 = vector.extract_strided_slice %75 {offsets = [0, 0], sizes = [1, 128], strides = [1, 1]} : vector<3x128xf32> to vector<1x128xf32>
    %77 = vector.extract_strided_slice %75 {offsets = [1, 0], sizes = [1, 128], strides = [1, 1]} : vector<3x128xf32> to vector<1x128xf32>
    %78 = vector.extract_strided_slice %75 {offsets = [2, 0], sizes = [1, 128], strides = [1, 1]} : vector<3x128xf32> to vector<1x128xf32>
    %cst_24 = arith.constant dense<0.000000e+00> : vector<8x128xf32>
    %79 = tpu.matmul %71, %73, %cst_24 {dimension_numbers = #tpu.dot_dimension_numbers<[1], [0], [0], [1], [0, 0, 1, 1], [], []>} : vector<8x128xbf16>, vector<128x128xbf16>, vector<8x128xf32> -> vector<8x128xf32>
    %80 = vector.broadcast %76 : vector<1x128xf32> to vector<8x128xf32>
    %81 = arith.addf %79, %80 : vector<8x128xf32>
    %cst_25 = arith.constant dense<0.000000e+00> : vector<8xf32>
    %82 = vector.multi_reduction <add>, %81, %cst_25 [1] : vector<8x128xf32> to vector<8xf32>
    %83 = vector.shape_cast %82 : vector<8xf32> to vector<8x1xf32>
    %cst_26 = arith.constant 0.000000e+00 : f32
    %84 = vector.shape_cast %2 : vector<1x128xi1> to vector<1x128xi1>
    %85 = vector.broadcast %84 : vector<1x128xi1> to vector<8x128xi1>
    %86 = vector.broadcast %cst_26 : f32 to vector<8x128xf32>
    %87 = arith.select %85, %81, %86 : vector<8x128xi1>, vector<8x128xf32>
    %cst_27 = arith.constant dense<0.000000e+00> : vector<8xf32>
    %88 = vector.multi_reduction <add>, %87, %cst_27 [1] : vector<8x128xf32> to vector<8xf32>
    %89 = vector.shape_cast %88 : vector<8xf32> to vector<8x1xf32>
    %cst_28 = arith.constant 3.125000e-02 : f32
    %90 = vector.broadcast %cst_28 : f32 to vector<8x1xf32>
    %91 = arith.mulf %89, %90 : vector<8x1xf32>
    %92 = arith.subf %83, %89 : vector<8x1xf32>
    %cst_29 = arith.constant 3.125000e-02 : f32
    %93 = vector.broadcast %cst_29 : f32 to vector<8x1xf32>
    %94 = arith.mulf %92, %93 : vector<8x1xf32>
    %95 = vector.shape_cast %2 : vector<1x128xi1> to vector<1x128xi1>
    %96 = vector.broadcast %95 : vector<1x128xi1> to vector<8x128xi1>
    %97 = vector.shape_cast %91 : vector<8x1xf32> to vector<8x1xf32>
    %98 = vector.broadcast %97 : vector<8x1xf32> to vector<8x128xf32>
    %99 = vector.shape_cast %94 : vector<8x1xf32> to vector<8x1xf32>
    %100 = vector.broadcast %99 : vector<8x1xf32> to vector<8x128xf32>
    %101 = arith.select %96, %98, %100 : vector<8x128xi1>, vector<8x128xf32>
    %102 = arith.subf %81, %101 : vector<8x128xf32>
    %cst_30 = arith.constant 0.000000e+00 : f32
    %103 = vector.shape_cast %4 : vector<1x128xi1> to vector<1x128xi1>
    %104 = vector.broadcast %103 : vector<1x128xi1> to vector<8x128xi1>
    %105 = vector.broadcast %cst_30 : f32 to vector<8x128xf32>
    %106 = arith.select %104, %102, %105 : vector<8x128xi1>, vector<8x128xf32>
    %107 = arith.mulf %106, %106 : vector<8x128xf32>
    %cst_31 = arith.constant dense<0.000000e+00> : vector<8xf32>
    %108 = vector.multi_reduction <add>, %107, %cst_31 [1] : vector<8x128xf32> to vector<8xf32>
    %109 = vector.shape_cast %108 : vector<8xf32> to vector<8x1xf32>
    %cst_32 = arith.constant 0.000000e+00 : f32
    %110 = vector.shape_cast %2 : vector<1x128xi1> to vector<1x128xi1>
    %111 = vector.broadcast %110 : vector<1x128xi1> to vector<8x128xi1>
    %112 = vector.broadcast %cst_32 : f32 to vector<8x128xf32>
    %113 = arith.select %111, %107, %112 : vector<8x128xi1>, vector<8x128xf32>
    %cst_33 = arith.constant dense<0.000000e+00> : vector<8xf32>
    %114 = vector.multi_reduction <add>, %113, %cst_33 [1] : vector<8x128xf32> to vector<8xf32>
    %115 = vector.shape_cast %114 : vector<8xf32> to vector<8x1xf32>
    %cst_34 = arith.constant 3.125000e-02 : f32
    %116 = vector.broadcast %cst_34 : f32 to vector<8x1xf32>
    %117 = arith.mulf %115, %116 : vector<8x1xf32>
    %118 = arith.subf %109, %115 : vector<8x1xf32>
    %cst_35 = arith.constant 3.125000e-02 : f32
    %119 = vector.broadcast %cst_35 : f32 to vector<8x1xf32>
    %120 = arith.mulf %118, %119 : vector<8x1xf32>
    %121 = vector.shape_cast %2 : vector<1x128xi1> to vector<1x128xi1>
    %122 = vector.broadcast %121 : vector<1x128xi1> to vector<8x128xi1>
    %123 = vector.shape_cast %117 : vector<8x1xf32> to vector<8x1xf32>
    %124 = vector.broadcast %123 : vector<8x1xf32> to vector<8x128xf32>
    %125 = vector.shape_cast %120 : vector<8x1xf32> to vector<8x1xf32>
    %126 = vector.broadcast %125 : vector<8x1xf32> to vector<8x128xf32>
    %127 = arith.select %122, %124, %126 : vector<8x128xi1>, vector<8x128xf32>
    %cst_36 = arith.constant 9.99999974E-6 : f32
    %128 = vector.broadcast %cst_36 : f32 to vector<8x128xf32>
    %129 = arith.addf %127, %128 : vector<8x128xf32>
    %130 = math.rsqrt %129 : vector<8x128xf32>
    %131 = vector.broadcast %77 : vector<1x128xf32> to vector<8x128xf32>
    %132 = arith.mulf %130, %131 : vector<8x128xf32>
    %133 = arith.mulf %106, %132 : vector<8x128xf32>
    %134 = vector.broadcast %78 : vector<1x128xf32> to vector<8x128xf32>
    %135 = arith.addf %133, %134 : vector<8x128xf32>
    %cst_37 = arith.constant 0.000000e+00 : f32
    %136 = vector.broadcast %cst_37 : f32 to vector<8x128xf32>
    %137 = arith.maximumf %135, %136 : vector<8x128xf32>
    %138 = arith.truncf %137 : vector<8x128xf32> to vector<8x128xbf16>
    %c0_38 = arith.constant 0 : index
    %c0_39 = arith.constant 0 : index
    %139 = vector.load %arg5[%c0_38, %c0_39] : memref<128x128xbf16, #tpu.memory_space<vmem>>, vector<128x128xbf16>
    %cst_40 = arith.constant dense<0.000000e+00> : vector<8x128xf32>
    %140 = tpu.matmul %138, %139, %cst_40 {dimension_numbers = #tpu.dot_dimension_numbers<[1], [0], [0], [1], [0, 0, 1, 1], [], []>} : vector<8x128xbf16>, vector<128x128xbf16>, vector<8x128xf32> -> vector<8x128xf32>
    %c0_41 = arith.constant 0 : index
    %c0_42 = arith.constant 0 : index
    %141 = vector.load %arg6[%c0_41, %c0_42] : memref<1x128xf32, #tpu.memory_space<vmem>>, vector<1x128xf32>
    %142 = vector.broadcast %141 : vector<1x128xf32> to vector<8x128xf32>
    %143 = arith.addf %140, %142 : vector<8x128xf32>
    %c0_43 = arith.constant 0 : index
    %c0_44 = arith.constant 0 : index
    %144 = vector.load %arg7[%c0_43, %c0_44] : memref<8x128xf32, #tpu.memory_space<vmem>>, vector<8x128xf32>
    tpu.vector_store %arg7[%c0_43, %c0_44], %143 {strides = array<i32>} : memref<8x128xf32, #tpu.memory_space<vmem>>, vector<8x128xf32>,
    return
  }
  func.func @transform_0(%arg0: i32) -> (i32, i32) {
    %c0_i32 = arith.constant 0 : i32
    %c0_i32_0 = arith.constant 0 : i32
    return %arg0, %c0_i32 : i32, i32
  }
  func.func @transform_1(%arg0: i32) -> (i32, i32) {
    %c0_i32 = arith.constant 0 : i32
    %c0_i32_0 = arith.constant 0 : i32
    %c0_i32_1 = arith.constant 0 : i32
    return %c0_i32, %c0_i32_0 : i32, i32
  }
  func.func @transform_2(%arg0: i32) -> (i32, i32, i32) {
    %c0_i32 = arith.constant 0 : i32
    %c0_i32_0 = arith.constant 0 : i32
    %c0_i32_1 = arith.constant 0 : i32
    %c0_i32_2 = arith.constant 0 : i32
    return %c0_i32, %c0_i32_0, %c0_i32_1 : i32, i32, i32
  }
  func.func @transform_3(%arg0: i32) -> (i32, i32, i32) {
    %c0_i32 = arith.constant 0 : i32
    %c0_i32_0 = arith.constant 0 : i32
    %c0_i32_1 = arith.constant 0 : i32
    %c0_i32_2 = arith.constant 0 : i32
    return %c0_i32, %c0_i32_0, %c0_i32_1 : i32, i32, i32
  }
  func.func @transform_4(%arg0: i32) -> (i32, i32) {
    %c0_i32 = arith.constant 0 : i32
    %c0_i32_0 = arith.constant 0 : i32
    %c0_i32_1 = arith.constant 0 : i32
    return %c0_i32, %c0_i32_0 : i32, i32
  }
  func.func @transform_5(%arg0: i32) -> (i32, i32) {
    %c0_i32 = arith.constant 0 : i32
    %c0_i32_0 = arith.constant 0 : i32
    %c0_i32_1 = arith.constant 0 : i32
    return %c0_i32, %c0_i32_0 : i32, i32
  }
  func.func @transform_6(%arg0: i32) -> (i32, i32) {
    %c0_i32 = arith.constant 0 : i32
    %c0_i32_0 = arith.constant 0 : i32
    return %arg0, %c0_i32 : i32, i32
  }
}

</mosaic_0001>

<bundles_post_ra>
// kernel: tpu_custom_call.1
= control target key start
LH: loop header
LB: loop body
LE: loop exit
PB: predicated region body
PF: predicated region fallthrough
CT: control target
= control target key end

     0   :  { %11 = vsyncpa [#allocation3], 0  ;;  %s785_s0 = inlined_call_operand.vmem [shape: bf16[8,32], index: 0, kind: input, shape index: {}]   ;;  %s786_s1 = inlined_call_operand.hbm [shape: bf16[32,128], index: 1, kind: input, shape index: {}]   ;;  %s787_s2 = inlined_call_operand.hbm [shape: bf16[1,128,128], index: 2, kind: input, shape index: {}]   ;;  %s788_s3 = inlined_call_operand.vmem [shape: f32[2,3,128], index: 3, kind: input, shape index: {}]   ;;  %s789_s4 = inlined_call_operand.hbm [shape: bf16[128,128], index: 4, kind: input, shape index: {}]   ;;  %s790_s5 = inlined_call_operand.vmem [shape: f32[1,128], index: 5, kind: input, shape index: {}]   ;;  %s791_s6 = inlined_call_operand.hbm [shape: f32[8,128], index: 6, kind: output, shape index: {}]  }
   0x1   :  { %12 = vsyncpa [#allocation6], 0 }
   0x2   :  { %13 = vsyncpa [#allocation4], 0  ;;  %s656_s21 = smov [#allocation5]   ;;  %s657_s23 = smov [#allocation2]  }
   0x3   :  { %s33_s22 = sshll.u32 %s656_s21, 4  ;;  %s21_s24 = sshll.u32 %s657_s23, 4  ;;  %s34_s22 = int_to_ptr.vmem [resolvable:$true] %s33_s22  ;;  %s22_s24 = int_to_ptr.vmem [resolvable:$true] %s21_s24 }
   0x4   :  { %s578_s25 = scalar_lea.vmem %s34_s22, 1024  ;;  %p583_p1 = scmp.lt.s32.totalorder %s34_s22, %s34_s22 }
   0x5   :  { %p579_p0 = scmp.ne.s32.totalorder %s34_s22, %s578_s25  ;;  %p584_p2 = scmp.lt.s32.totalorder %s578_s25, %s578_s25 }
   0x7   :  { %p585_p3 = por %p584_p2, %p583_p1 }
   0x9   :  { %p586_p4 = pnand %p585_p3, %p579_p0 }
   0xb   :  { %589 = shalt.err (!%p586_p4)
}
   0xc   :  { %s658_s26 = smov 64   ;;  %s659_s27 = smov 4  }
   0xd   :  { %39 = dma.hbm_to_vmem [thread:$0]  %s787_s2, 1024, %s34_s22, [#allocation6], %s658_s26, %s658_s26, %s659_s27  }
   0xe   :  { %s598_s30 = scalar_lea.vmem %s22_s24, 256  ;;  %p603_p6 = scmp.lt.s32.totalorder %s22_s24, %s22_s24 }
   0xf   :  { %p599_p5 = scmp.ne.s32.totalorder %s22_s24, %s598_s30  ;;  %p604_p7 = scmp.lt.s32.totalorder %s598_s30, %s598_s30 }
  0x11   :  { %p605_p8 = por %p604_p7, %p603_p6 }
  0x13   :  { %p606_p9 = pnand %p605_p8, %p599_p5 }
  0x15   :  { %609 = shalt.err (!%p606_p9)
}
  0x16   :  { %27 = dma.hbm_to_vmem [thread:$0]  %s786_s1, 256, %s22_s24, [#allocation3], %s658_s26, %s658_s26, %s659_s27  }
  0x17   :  { %s660_s9 = smov [#allocation7]  }
  0x18   :  { %s47_s10 = sshll.u32 %s660_s9, 4  ;;  %s48_s10 = int_to_ptr.vmem [resolvable:$true] %s47_s10 }
  0x19   :  { %s618_s11 = scalar_lea.vmem %s48_s10, 1024  ;;  %p623_p11 = scmp.lt.s32.totalorder %s48_s10, %s48_s10 }
  0x1a   :  { %p619_p10 = scmp.ne.s32.totalorder %s48_s10, %s618_s11  ;;  %p624_p12 = scmp.lt.s32.totalorder %s618_s11, %s618_s11 }
  0x1c   :  { %p625_p13 = por %p624_p12, %p623_p11 }
  0x1e   :  { %p626_p0 = pnand %p625_p13, %p619_p10 }
  0x20   :  { %629 = shalt.err (!%p626_p0)
}
  0x21   :  { %53 = dma.hbm_to_vmem [thread:$0]  %s789_s4, 1024, %s48_s10, [#allocation6], %s658_s26, %s658_s26, %s659_s27  }
  0x22   :  { %650 = dma.done.wait [#allocation3], 256  }
  0x23   :  { %651 = vsyncadd [#allocation3], 4294967040 }
  0x24   :  { %652 = dma.done.wait [#allocation6], 2048  }
  0x25   :  { %653 = vsyncadd [#allocation6], 4294965248  ;;  %v661_v0 = vmov 0.0   ;;  %vm662_vm0 = vmmov 0   ;;  %v548_v1 = vld [vmem:[#allocation2 + $0x8] sm:$0xff]   ;;  %v549_v2 = vld [vmem:[#allocation2] sm:$0xff]   ;;  %v66_v4 = vlaneseq }
  0x26   :  { %492 = vmatprep.subr.bf16.mxu0 %v661_v0  ;;  %496 = vmatprep.mubr.msk.bf16.mxu0 %vm662_vm0, %v661_v0  ;;  %vm92_vm1 = vcmask 261120   ;;  %v70_v3 = vld [vmem:[%s785_s0] sm:$0xf]  ;;  %v550_v26 = vld [vmem:[#allocation5 + $0x38] sm:$0xff]   ;;  %v552_v28 = vld [vmem:[#allocation5 + $0x28] sm:$0xff]   ;;  %s663_s17 = smov [#allocation8]  }
  0x27   :  { %500 = vmatprep.subr.bf16.mxu1 %v661_v0  ;;  %516 = vmatprep.mubr.msk.bf16.mxu1 %vm662_vm0, %v661_v0  ;;  %v718_v5 = vshrl.u32 %v66_v4, 7  ;;  %v75_v7 = vld [vmem:[%s788_s3] sm:$0x7]  ;;  %v726_v9 = vand.u32 127, %v66_v4  ;;  %v553_v29 = vld [vmem:[#allocation5 + $0x20] sm:$0xff]   ;;  %v554_v30 = vld [vmem:[#allocation5 + $0x18] sm:$0xff]  }
  0x28   :  { %493 = vmatpush3.bf16.msra.mxu0 %v548_v1  ;;  %501 = vmatpush3.bf16.msra.mxu1 %v550_v26  ;;  %v551_v27 = vld [vmem:[#allocation5 + $0x30] sm:$0xff]   ;;  %v556_v32 = vld [vmem:[#allocation5 + $0x8] sm:$0xff]   ;;  %v557_v33 = vld [vmem:[#allocation5] sm:$0xff]   ;;  %s440_s18 = sshll.u32 %s663_s17, 4  ;;  %s441_s18 = int_to_ptr.vmem [resolvable:$true] %s440_s18 }
  0x29   :  { %494 = vmatprep.subr.bf16.mxu0 %v661_v0  ;;  %v78_v6 = vsub.s32 0, %v718_v5  ;;  %vm68_vm2 = vcmp.lt.s32.totalorder %v726_v9, 32  ;;  %vm69_vm3 = vcmp.lt.s32.totalorder %v726_v9, 64  ;;  %502 = vmatprep.subr.bf16.mxu1 %v661_v0  ;;  %v555_v31 = vld [vmem:[#allocation5 + $0x10] sm:$0xff]   ;;  %v165_v41 = vsub.s32 1, %v718_v5  ;;  %s630_s19 = scalar_lea.vmem %s441_s18, 128  ;;  %p635_p2 = scmp.lt.s32.totalorder %s441_s18, %s441_s18 }
  0x2a   :  { %v171_v43 = vsub.s32 2, %v718_v5  ;;  %v453_v51 = vld [vmem:[%s788_s3 + $0x4] sm:$0x7]  ;;  %v462_v9 = vld [vmem:[%s790_s5] ss:$0 sm:$0xff]  ;;  %p631_p1 = scmp.ne.s32.totalorder %s441_s18, %s630_s19  ;;  %p636_p3 = scmp.lt.s32.totalorder %s630_s19, %s630_s19 }
  0x2b   :  { %v79_v8 = vrot.slane %v75_v7, %v78_v6  ;;  %v166_v42 = vrot.slane %v75_v7, %v165_v41  ;;  %v197_v52 = vrot.slane %v453_v51, %v78_v6 }
  0x2c   :  { %495 = vmatpush3.bf16.msra.mxu0 %v549_v2  ;;  %503 = vmatpush3.bf16.msra.mxu1 %v551_v27  ;;  %v172_v46 = vrot.slane %v75_v7, %v171_v43  ;;  %v558_v7 = vld [vmem:[#allocation7 + $0x38] sm:$0xff]   ;;  %p637_p4 = por %p636_p3, %p635_p2 }
  0x2d   :  { %520 = vmatprep.subr.bf16.mxu0 %v661_v0  ;;  %504 = vmatprep.subr.bf16.mxu1 %v661_v0 }
  0x2e   :  { %p638_p5 = pnand %p637_p4, %p631_p1 }
  0x2f   :  { %497 = vmatmul.mubr.msk.bf16.vlgmr.msra.gmra.mxu0 %vm92_vm1, %v70_v3 }
  0x30   :  { %536 = vmatprep.mubr.msk.bf16.mxu0 %vm662_vm0, %v661_v0  ;;  %505 = vmatpush3.bf16.msra.mxu1 %v552_v28 }
  0x31   :  { %506 = vmatprep.subr.bf16.mxu1 %v661_v0  ;;  %521 = vmatpush3.bf16.msra.mxu0 %v558_v7 }
  0x32   :  { %522 = vmatprep.subr.bf16.mxu0 %v661_v0 }
  0x34   :  { %507 = vmatpush3.bf16.msra.mxu1 %v553_v29 }
  0x35   :  { %508 = vmatprep.subr.bf16.mxu1 %v661_v0 }
  0x38   :  { %509 = vmatpush3.bf16.msra.mxu1 %v554_v30 }
  0x39   :  { %510 = vmatprep.subr.bf16.mxu1 %v661_v0 }
  0x3c   :  { %511 = vmatpush3.bf16.msra.mxu1 %v555_v31 }
  0x3d   :  { %512 = vmatprep.subr.bf16.mxu1 %v661_v0 }
  0x40   :  { %513 = vmatpush3.bf16.msra.mxu1 %v556_v32 }
  0x41   :  { %514 = vmatprep.subr.bf16.mxu1 %v661_v0 }
  0x44   :  { %515 = vmatpush3.bf16.msra.mxu1 %v557_v33 }
  0xef   :  { %v130_v10 = vpop.f32.mrf.mxu0 }
  0xf0   :  { %v131_v11 = vadd.f32 %v130_v10, %v79_v8  ;;  %v559_v8 = vld [vmem:[#allocation7 + $0x30] sm:$0xff]   ;;  %v560_v10 = vld [vmem:[#allocation7 + $0x28] sm:$0xff]  }
  0xf1   :  { %v498_v12 = vpop.f32.mrf.mxu0  ;;  %523 = vmatpush3.bf16.msra.mxu0 %v559_v8 }
  0xf2   :  { %136 = vadd.xlane.f32.xlu0 %v131_v11  ;;  %v140_v15 = vsel %vm68_vm2, %v131_v11, 0.0  ;;  %524 = vmatprep.subr.bf16.mxu0 %v661_v0  ;;  %v562_v12 = vld [vmem:[#allocation7 + $0x18] sm:$0xff]  }
  0xf3   :  { %v133_v13 = vpop.f32.mrf.mxu0 }
  0xf4   :  { %v563_v13 = vld [vmem:[#allocation7 + $0x10] sm:$0xff]  }
  0xf5   :  { %v499_v14 = vpop.f32.mrf.mxu0  ;;  %525 = vmatpush3.bf16.msra.mxu0 %v560_v10 }
  0xf6   :  { %141 = vadd.xlane.f32.xlu0 %v140_v15  ;;  %526 = vmatprep.subr.bf16.mxu0 %v661_v0  ;;  %v564_v14 = vld [vmem:[#allocation7 + $0x8] sm:$0xff]   ;;  %v565_v15 = vld [vmem:[#allocation7] sm:$0xff]  }
 0x17b   :  { %v137_v16 = vpop.xlane.xlu0 %136 }
 0x17f   :  { %v142_v17 = vpop.xlane.xlu0 %141 }
 0x180   :  { %v144_v18 = vsub.f32 %v137_v16, %v142_v17  ;;  %v143_v19 = vmul.f32 0.03125, %v142_v17 }
 0x182   :  { %v145_v20 = vmul.f32 0.03125, %v144_v18 }
 0x184   :  { %v146_v21 = vsel %vm68_vm2, %v143_v19, %v145_v20 }
 0x185   :  { %v147_v22 = vsub.f32 %v131_v11, %v146_v21  ;;  %v561_v11 = vld [vmem:[#allocation7 + $0x20] sm:$0xff]  }
 0x186   :  { %527 = vmatpush3.bf16.msra.mxu0 %v561_v11 }
 0x187   :  { %v150_v23 = vsel %vm69_vm3, %v147_v22, 0.0  ;;  %528 = vmatprep.subr.bf16.mxu0 %v661_v0 }
 0x188   :  { %v151_v24 = vmul.f32 %v150_v23, %v150_v23 }
 0x18a   :  { %152 = vadd.xlane.f32.xlu1 %v151_v24  ;;  %v154_v25 = vsel %vm68_vm2, %v151_v24, 0.0  ;;  %529 = vmatpush3.bf16.msra.mxu0 %v562_v12 }
 0x18b   :  { %530 = vmatprep.subr.bf16.mxu0 %v661_v0 }
 0x18e   :  { %155 = vadd.xlane.f32.xlu1 %v154_v25  ;;  %531 = vmatpush3.bf16.msra.mxu0 %v563_v13  ;;  %v318_v25 = vrot.slane %v453_v51, %v171_v43 }
 0x18f   :  { %532 = vmatprep.subr.bf16.mxu0 %v661_v0 }
 0x192   :  { %533 = vmatpush3.bf16.msra.mxu0 %v564_v14 }
 0x193   :  { %534 = vmatprep.subr.bf16.mxu0 %v661_v0 }
 0x196   :  { %535 = vmatpush3.bf16.msra.mxu0 %v565_v15 }
 0x213   :  { %v153_v34 = vpop.xlane.xlu1 %152 }
 0x217   :  { %v156_v35 = vpop.xlane.xlu1 %155 }
 0x218   :  { %v158_v36 = vsub.f32 %v153_v34, %v156_v35  ;;  %v157_v37 = vmul.f32 0.03125, %v156_v35 }
 0x21a   :  { %v159_v38 = vmul.f32 0.03125, %v158_v36 }
 0x21c   :  { %v160_v39 = vsel %vm68_vm2, %v157_v37, %v159_v38 }
 0x21d   :  { %v161_v40 = vadd.f32 1e-05, %v160_v39 }
 0x21f   :  { %566 = vrsqrt.f32 %v161_v40 }
 0x22c   :  { %v567_v44 = vpop.eup %566 }
 0x22d   :  { %v167_v45 = vmul.f32 %v567_v44, %v166_v42 }
 0x22f   :  { %v168_v47 = vmul.f32 %v167_v45, %v150_v23  ;;  %v312_v23 = vrot.slane %v453_v51, %v165_v41 }
 0x231   :  { %v173_v48 = vadd.f32 %v172_v46, %v168_v47 }
 0x233   :  { %v174_v49 = vmax.f32 %v173_v48, 0.0 }
 0x235   :  { %v175_v50 = vpack.c.bf16 %v174_v49, %v174_v49 }
 0x237   :  { %517 = vmatmul.mubr.bf16.vlgmr.msra.gmra.mxu1 %v175_v50 }
 0x2f7   :  { %v280_v53 = vpop.f32.mrf.mxu1 }
 0x2f8   :  { %v281_v54 = vadd.f32 %v280_v53, %v197_v52 }
 0x2f9   :  { %v518_v55 = vpop.f32.mrf.mxu1 }
 0x2fa   :  { %286 = vadd.xlane.f32.xlu0 %v281_v54  ;;  %v288_v56 = vsel %vm68_vm2, %v281_v54, 0.0 }
 0x2fb   :  { %289 = vadd.xlane.f32.xlu1 %v288_v56  ;;  %v283_v57 = vpop.f32.mrf.mxu1 }
 0x2fd   :  { %v519_v58 = vpop.f32.mrf.mxu1 }
 0x383   :  { %v287_v59 = vpop.xlane.xlu0 %286 }
 0x384   :  { %v290_v60 = vpop.xlane.xlu1 %289 }
 0x385   :  { %v292_v61 = vsub.f32 %v287_v59, %v290_v60  ;;  %v291_v62 = vmul.f32 0.03125, %v290_v60 }
 0x387   :  { %v293_v63 = vmul.f32 0.03125, %v292_v61 }
 0x389   :  { %v294_v1 = vsel %vm68_vm2, %v291_v62, %v293_v63 }
 0x38a   :  { %v295_v2 = vsub.f32 %v281_v54, %v294_v1 }
 0x38c   :  { %v296_v3 = vsel %vm69_vm3, %v295_v2, 0.0 }
 0x38d   :  { %v297_v4 = vmul.f32 %v296_v3, %v296_v3 }
 0x38f   :  { %298 = vadd.xlane.f32.xlu0 %v297_v4  ;;  %v300_v6 = vsel %vm68_vm2, %v297_v4, 0.0 }
 0x390   :  { %301 = vadd.xlane.f32.xlu1 %v300_v6 }
 0x418   :  { %v299_v16 = vpop.xlane.xlu0 %298 }
 0x419   :  { %v302_v17 = vpop.xlane.xlu1 %301 }
 0x41a   :  { %v304_v18 = vsub.f32 %v299_v16, %v302_v17  ;;  %v303_v19 = vmul.f32 0.03125, %v302_v17 }
 0x41c   :  { %v305_v20 = vmul.f32 0.03125, %v304_v18 }
 0x41e   :  { %v306_v21 = vsel %vm68_vm2, %v303_v19, %v305_v20 }
 0x41f   :  { %v307_v22 = vadd.f32 1e-05, %v306_v21 }
 0x421   :  { %568 = vrsqrt.f32 %v307_v22 }
 0x42e   :  { %v569_v24 = vpop.eup %568 }
 0x42f   :  { %v313_v26 = vmul.f32 %v569_v24, %v312_v23 }
 0x431   :  { %v314_v0 = vmul.f32 %v313_v26, %v296_v3 }
 0x433   :  { %v319_v27 = vadd.f32 %v318_v25, %v314_v0 }
 0x435   :  { %v320_v28 = vmax.f32 %v319_v27, 0.0 }
 0x437   :  { %v321_v29 = vpack.c.bf16 %v320_v28, %v320_v28 }
 0x439   :  { %537 = vmatmul.mubr.bf16.vlgmr.msra.gmra.mxu0 %v321_v29 }
 0x4f9   :  { %v427_v30 = vpop.f32.mrf.mxu0 }
 0x4fa   :  { %v428_v31 = vadd.f32 %v462_v9, %v427_v30 }
 0x4fb   :  { %v538_v32 = vpop.f32.mrf.mxu0 }
 0x4fc   :  { %433 = vst [vmem:[#allocation8] sm:$0xff] %v428_v31 }
 0x4fd   :  { %v430_v33 = vpop.f32.mrf.mxu0 }
 0x4fe   :  { %641 = shalt.err (!%p638_p5)
}
 0x4ff   :  { %443 = dma.vmem_to_hbm [thread:$0]  %s441_s18, 128, %s791_s6, [#allocation4]   ;;  %v539_v5 = vpop.f32.mrf.mxu0 }
 0x500   :  { %654 = dma.done.wait [#allocation4], 128  }
 0x501   :  { %655 = vsyncadd [#allocation4], 4294967168 }
 0x502   :  { %447 = vsyncpa [#allocation3], 1 }
 0x503   :  { %448 = vsyncpa [#allocation6], 1 }
 0x504   :  { %449 = vsyncpa [#allocation4], 1 }

// kernel: tpu_custom_call.1
= control target key start
LH: loop header
LB: loop body
LE: loop exit
PB: predicated region body
PF: predicated region fallthrough
CT: control target
= control target key end

     0   :  { %11 = vsyncpa [#allocation3], 0  ;;  %s785_s0 = inlined_call_operand.vmem [shape: bf16[8,32], index: 0, kind: input, shape index: {}]   ;;  %s786_s1 = inlined_call_operand.hbm [shape: bf16[32,128], index: 1, kind: input, shape index: {}]   ;;  %s787_s2 = inlined_call_operand.hbm [shape: bf16[1,128,128], index: 2, kind: input, shape index: {}]   ;;  %s788_s3 = inlined_call_operand.vmem [shape: f32[2,3,128], index: 3, kind: input, shape index: {}]   ;;  %s789_s4 = inlined_call_operand.hbm [shape: bf16[128,128], index: 4, kind: input, shape index: {}]   ;;  %s790_s5 = inlined_call_operand.vmem [shape: f32[1,128], index: 5, kind: input, shape index: {}]   ;;  %s791_s6 = inlined_call_operand.hbm [shape: f32[8,128], index: 6, kind: output, shape index: {}]  }
   0x1   :  { %12 = vsyncpa [#allocation6], 0 }
   0x2   :  { %13 = vsyncpa [#allocation4], 0  ;;  %s656_s21 = smov [#allocation5]   ;;  %s657_s23 = smov [#allocation2]  }
   0x3   :  { %s33_s22 = sshll.u32 %s656_s21, 4  ;;  %s21_s24 = sshll.u32 %s657_s23, 4  ;;  %s34_s22 = int_to_ptr.vmem [resolvable:$true] %s33_s22  ;;  %s22_s24 = int_to_ptr.vmem [resolvable:$true] %s21_s24 }
   0x4   :  { %s578_s25 = scalar_lea.vmem %s34_s22, 1024  ;;  %p583_p1 = scmp.lt.s32.totalorder %s34_s22, %s34_s22 }
   0x5   :  { %p579_p0 = scmp.ne.s32.totalorder %s34_s22, %s578_s25  ;;  %p584_p2 = scmp.lt.s32.totalorder %s578_s25, %s578_s25 }
   0x7   :  { %p585_p3 = por %p584_p2, %p583_p1 }
   0x9   :  { %p586_p4 = pnand %p585_p3, %p579_p0 }
   0xb   :  { %589 = shalt.err (!%p586_p4)
}
   0xc   :  { %s658_s26 = smov 64   ;;  %s659_s27 = smov 4  }
   0xd   :  { %39 = dma.hbm_to_vmem [thread:$0]  %s787_s2, 1024, %s34_s22, [#allocation6], %s658_s26, %s658_s26, %s659_s27  }
   0xe   :  { %s598_s30 = scalar_lea.vmem %s22_s24, 256  ;;  %p603_p6 = scmp.lt.s32.totalorder %s22_s24, %s22_s24 }
   0xf   :  { %p599_p5 = scmp.ne.s32.totalorder %s22_s24, %s598_s30  ;;  %p604_p7 = scmp.lt.s32.totalorder %s598_s30, %s598_s30 }
  0x11   :  { %p605_p8 = por %p604_p7, %p603_p6 }
  0x13   :  { %p606_p9 = pnand %p605_p8, %p599_p5 }
  0x15   :  { %609 = shalt.err (!%p606_p9)
}
  0x16   :  { %27 = dma.hbm_to_vmem [thread:$0]  %s786_s1, 256, %s22_s24, [#allocation3], %s658_s26, %s658_s26, %s659_s27  }
  0x17   :  { %s660_s9 = smov [#allocation7]  }
  0x18   :  { %s47_s10 = sshll.u32 %s660_s9, 4  ;;  %s48_s10 = int_to_ptr.vmem [resolvable:$true] %s47_s10 }
  0x19   :  { %s618_s11 = scalar_lea.vmem %s48_s10, 1024  ;;  %p623_p11 = scmp.lt.s32.totalorder %s48_s10, %s48_s10 }
  0x1a   :  { %p619_p10 = scmp.ne.s32.totalorder %s48_s10, %s618_s11  ;;  %p624_p12 = scmp.lt.s32.totalorder %s618_s11, %s618_s11 }
  0x1c   :  { %p625_p13 = por %p624_p12, %p623_p11 }
  0x1e   :  { %p626_p0 = pnand %p625_p13, %p619_p10 }
  0x20   :  { %629 = shalt.err (!%p626_p0)
}
  0x21   :  { %53 = dma.hbm_to_vmem [thread:$0]  %s789_s4, 1024, %s48_s10, [#allocation6], %s658_s26, %s658_s26, %s659_s27  }
  0x22   :  { %650 = dma.done.wait [#allocation3], 256  }
  0x23   :  { %651 = vsyncadd [#allocation3], 4294967040 }
  0x24   :  { %652 = dma.done.wait [#allocation6], 2048  }
  0x25   :  { %653 = vsyncadd [#allocation6], 4294965248  ;;  %v661_v0 = vmov 0.0   ;;  %vm662_vm0 = vmmov 0   ;;  %v548_v1 = vld [vmem:[#allocation2 + $0x8] sm:$0xff]   ;;  %v549_v2 = vld [vmem:[#allocation2] sm:$0xff]   ;;  %v66_v4 = vlaneseq }
  0x26   :  { %492 = vmatprep.subr.bf16.mxu0 %v661_v0  ;;  %496 = vmatprep.mubr.msk.bf16.mxu0 %vm662_vm0, %v661_v0  ;;  %vm92_vm1 = vcmask 261120   ;;  %v70_v3 = vld [vmem:[%s785_s0] sm:$0xf]  ;;  %v550_v26 = vld [vmem:[#allocation5 + $0x38] sm:$0xff]   ;;  %v552_v28 = vld [vmem:[#allocation5 + $0x28] sm:$0xff]   ;;  %s663_s17 = smov [#allocation8]  }
  0x27   :  { %500 = vmatprep.subr.bf16.mxu1 %v661_v0  ;;  %516 = vmatprep.mubr.msk.bf16.mxu1 %vm662_vm0, %v661_v0  ;;  %v718_v5 = vshrl.u32 %v66_v4, 7  ;;  %v75_v7 = vld [vmem:[%s788_s3] sm:$0x7]  ;;  %v726_v9 = vand.u32 127, %v66_v4  ;;  %v553_v29 = vld [vmem:[#allocation5 + $0x20] sm:$0xff]   ;;  %v554_v30 = vld [vmem:[#allocation5 + $0x18] sm:$0xff]  }
  0x28   :  { %493 = vmatpush3.bf16.msra.mxu0 %v548_v1  ;;  %501 = vmatpush3.bf16.msra.mxu1 %v550_v26  ;;  %v551_v27 = vld [vmem:[#allocation5 + $0x30] sm:$0xff]   ;;  %v556_v32 = vld [vmem:[#allocation5 + $0x8] sm:$0xff]   ;;  %v557_v33 = vld [vmem:[#allocation5] sm:$0xff]   ;;  %s440_s18 = sshll.u32 %s663_s17, 4  ;;  %s441_s18 = int_to_ptr.vmem [resolvable:$true] %s440_s18 }
  0x29   :  { %494 = vmatprep.subr.bf16.mxu0 %v661_v0  ;;  %v78_v6 = vsub.s32 0, %v718_v5  ;;  %vm68_vm2 = vcmp.lt.s32.totalorder %v726_v9, 32  ;;  %vm69_vm3 = vcmp.lt.s32.totalorder %v726_v9, 64  ;;  %502 = vmatprep.subr.bf16.mxu1 %v661_v0  ;;  %v555_v31 = vld [vmem:[#allocation5 + $0x10] sm:$0xff]   ;;  %v165_v41 = vsub.s32 1, %v718_v5  ;;  %s630_s19 = scalar_lea.vmem %s441_s18, 128  ;;  %p635_p2 = scmp.lt.s32.totalorder %s441_s18, %s441_s18 }
  0x2a   :  { %v171_v43 = vsub.s32 2, %v718_v5  ;;  %v453_v51 = vld [vmem:[%s788_s3 + $0x4] sm:$0x7]  ;;  %v462_v9 = vld [vmem:[%s790_s5] ss:$0 sm:$0xff]  ;;  %p631_p1 = scmp.ne.s32.totalorder %s441_s18, %s630_s19  ;;  %p636_p3 = scmp.lt.s32.totalorder %s630_s19, %s630_s19 }
  0x2b   :  { %v79_v8 = vrot.slane %v75_v7, %v78_v6  ;;  %v166_v42 = vrot.slane %v75_v7, %v165_v41  ;;  %v197_v52 = vrot.slane %v453_v51, %v78_v6 }
  0x2c   :  { %495 = vmatpush3.bf16.msra.mxu0 %v549_v2  ;;  %503 = vmatpush3.bf16.msra.mxu1 %v551_v27  ;;  %v172_v46 = vrot.slane %v75_v7, %v171_v43  ;;  %v558_v7 = vld [vmem:[#allocation7 + $0x38] sm:$0xff]   ;;  %p637_p4 = por %p636_p3, %p635_p2 }
  0x2d   :  { %520 = vmatprep.subr.bf16.mxu0 %v661_v0  ;;  %504 = vmatprep.subr.bf16.mxu1 %v661_v0 }
  0x2e   :  { %p638_p5 = pnand %p637_p4, %p631_p1 }
  0x2f   :  { %497 = vmatmul.mubr.msk.bf16.vlgmr.msra.gmra.mxu0 %vm92_vm1, %v70_v3 }
  0x30   :  { %536 = vmatprep.mubr.msk.bf16.mxu0 %vm662_vm0, %v661_v0  ;;  %505 = vmatpush3.bf16.msra.mxu1 %v552_v28 }
  0x31   :  { %506 = vmatprep.subr.bf16.mxu1 %v661_v0  ;;  %521 = vmatpush3.bf16.msra.mxu0 %v558_v7 }
  0x32   :  { %522 = vmatprep.subr.bf16.mxu0 %v661_v0 }
  0x34   :  { %507 = vmatpush3.bf16.msra.mxu1 %v553_v29 }
  0x35   :  { %508 = vmatprep.subr.bf16.mxu1 %v661_v0 }
  0x38   :  { %509 = vmatpush3.bf16.msra.mxu1 %v554_v30 }
  0x39   :  { %510 = vmatprep.subr.bf16.mxu1 %v661_v0 }
  0x3c   :  { %511 = vmatpush3.bf16.msra.mxu1 %v555_v31 }
  0x3d   :  { %512 = vmatprep.subr.bf16.mxu1 %v661_v0 }
  0x40   :  { %513 = vmatpush3.bf16.msra.mxu1 %v556_v32 }
  0x41   :  { %514 = vmatprep.subr.bf16.mxu1 %v661_v0 }
  0x44   :  { %515 = vmatpush3.bf16.msra.mxu1 %v557_v33 }
  0xef   :  { %v130_v10 = vpop.f32.mrf.mxu0 }
  0xf0   :  { %v131_v11 = vadd.f32 %v130_v10, %v79_v8  ;;  %v559_v8 = vld [vmem:[#allocation7 + $0x30] sm:$0xff]   ;;  %v560_v10 = vld [vmem:[#allocation7 + $0x28] sm:$0xff]  }
  0xf1   :  { %v498_v12 = vpop.f32.mrf.mxu0  ;;  %523 = vmatpush3.bf16.msra.mxu0 %v559_v8 }
  0xf2   :  { %136 = vadd.xlane.f32.xlu0 %v131_v11  ;;  %v140_v15 = vsel %vm68_vm2, %v131_v11, 0.0  ;;  %524 = vmatprep.subr.bf16.mxu0 %v661_v0  ;;  %v562_v12 = vld [vmem:[#allocation7 + $0x18] sm:$0xff]  }
  0xf3   :  { %v133_v13 = vpop.f32.mrf.mxu0 }
  0xf4   :  { %v563_v13 = vld [vmem:[#allocation7 + $0x10] sm:$0xff]  }
  0xf5   :  { %v499_v14 = vpop.f32.mrf.mxu0  ;;  %525 = vmatpush3.bf16.msra.mxu0 %v560_v10 }
  0xf6   :  { %141 = vadd.xlane.f32.xlu0 %v140_v15  ;;  %526 = vmatprep.subr.bf16.mxu0 %v661_v0  ;;  %v564_v14 = vld [vmem:[#allocation7 + $0x8] sm:$0xff]   ;;  %v565_v15 = vld [vmem:[#allocation7] sm:$0xff]  }
 0x17b   :  { %v137_v16 = vpop.xlane.xlu0 %136 }
 0x17f   :  { %v142_v17 = vpop.xlane.xlu0 %141 }
 0x180   :  { %v144_v18 = vsub.f32 %v137_v16, %v142_v17  ;;  %v143_v19 = vmul.f32 0.03125, %v142_v17 }
 0x182   :  { %v145_v20 = vmul.f32 0.03125, %v144_v18 }
 0x184   :  { %v146_v21 = vsel %vm68_vm2, %v143_v19, %v145_v20 }
 0x185   :  { %v147_v22 = vsub.f32 %v131_v11, %v146_v21  ;;  %v561_v11 = vld [vmem:[#allocation7 + $0x20] sm:$0xff]  }
 0x186   :  { %527 = vmatpush3.bf16.msra.mxu0 %v561_v11 }
 0x187   :  { %v150_v23 = vsel %vm69_vm3, %v147_v22, 0.0  ;;  %528 = vmatprep.subr.bf16.mxu0 %v661_v0 }
 0x188   :  { %v151_v24 = vmul.f32 %v150_v23, %v150_v23 }
 0x18a   :  { %152 = vadd.xlane.f32.xlu1 %v151_v24  ;;  %v154_v25 = vsel %vm68_vm2, %v151_v24, 0.0  ;;  %529 = vmatpush3.bf16.msra.mxu0 %v562_v12 }
 0x18b   :  { %530 = vmatprep.subr.bf16.mxu0 %v661_v0 }
 0x18e   :  { %155 = vadd.xlane.f32.xlu1 %v154_v25  ;;  %531 = vmatpush3.bf16.msra.mxu0 %v563_v13  ;;  %v318_v25 = vrot.slane %v453_v51, %v171_v43 }
 0x18f   :  { %532 = vmatprep.subr.bf16.mxu0 %v661_v0 }
 0x192   :  { %533 = vmatpush3.bf16.msra.mxu0 %v564_v14 }
 0x193   :  { %534 = vmatprep.subr.bf16.mxu0 %v661_v0 }
 0x196   :  { %535 = vmatpush3.bf16.msra.mxu0 %v565_v15 }
 0x213   :  { %v153_v34 = vpop.xlane.xlu1 %152 }
 0x217   :  { %v156_v35 = vpop.xlane.xlu1 %155 }
 0x218   :  { %v158_v36 = vsub.f32 %v153_v34, %v156_v35  ;;  %v157_v37 = vmul.f32 0.03125, %v156_v35 }
 0x21a   :  { %v159_v38 = vmul.f32 0.03125, %v158_v36 }
 0x21c   :  { %v160_v39 = vsel %vm68_vm2, %v157_v37, %v159_v38 }
 0x21d   :  { %v161_v40 = vadd.f32 1e-05, %v160_v39 }
 0x21f   :  { %566 = vrsqrt.f32 %v161_v40 }
 0x22c   :  { %v567_v44 = vpop.eup %566 }
 0x22d   :  { %v167_v45 = vmul.f32 %v567_v44, %v166_v42 }
 0x22f   :  { %v168_v47 = vmul.f32 %v167_v45, %v150_v23  ;;  %v312_v23 = vrot.slane %v453_v51, %v165_v41 }
 0x231   :  { %v173_v48 = vadd.f32 %v172_v46, %v168_v47 }
 0x233   :  { %v174_v49 = vmax.f32 %v173_v48, 0.0 }
 0x235   :  { %v175_v50 = vpack.c.bf16 %v174_v49, %v174_v49 }
 0x237   :  { %517 = vmatmul.mubr.bf16.vlgmr.msra.gmra.mxu1 %v175_v50 }
 0x2f7   :  { %v280_v53 = vpop.f32.mrf.mxu1 }
 0x2f8   :  { %v281_v54 = vadd.f32 %v280_v53, %v197_v52 }
 0x2f9   :  { %v518_v55 = vpop.f32.mrf.mxu1 }
 0x2fa   :  { %286 = vadd.xlane.f32.xlu0 %v281_v54  ;;  %v288_v56 = vsel %vm68_vm2, %v281_v54, 0.0 }
 0x2fb   :  { %289 = vadd.xlane.f32.xlu1 %v288_v56  ;;  %v283_v57 = vpop.f32.mrf.mxu1 }
 0x2fd   :  { %v519_v58 = vpop.f32.mrf.mxu1 }
 0x383   :  { %v287_v59 = vpop.xlane.xlu0 %286 }
 0x384   :  { %v290_v60 = vpop.xlane.xlu1 %289 }
 0x385   :  { %v292_v61 = vsub.f32 %v287_v59, %v290_v60  ;;  %v291_v62 = vmul.f32 0.03125, %v290_v60 }
 0x387   :  { %v293_v63 = vmul.f32 0.03125, %v292_v61 }
 0x389   :  { %v294_v1 = vsel %vm68_vm2, %v291_v62, %v293_v63 }
 0x38a   :  { %v295_v2 = vsub.f32 %v281_v54, %v294_v1 }
 0x38c   :  { %v296_v3 = vsel %vm69_vm3, %v295_v2, 0.0 }
 0x38d   :  { %v297_v4 = vmul.f32 %v296_v3, %v296_v3 }
 0x38f   :  { %298 = vadd.xlane.f32.xlu0 %v297_v4  ;;  %v300_v6 = vsel %vm68_vm2, %v297_v4, 0.0 }
 0x390   :  { %301 = vadd.xlane.f32.xlu1 %v300_v6 }
 0x418   :  { %v299_v16 = vpop.xlane.xlu0 %298 }
 0x419   :  { %v302_v17 = vpop.xlane.xlu1 %301 }
 0x41a   :  { %v304_v18 = vsub.f32 %v299_v16, %v302_v17  ;;  %v303_v19 = vmul.f32 0.03125, %v302_v17 }
 0x41c   :  { %v305_v20 = vmul.f32 0.03125, %v304_v18 }
 0x41e   :  { %v306_v21 = vsel %vm68_vm2, %v303_v19, %v305_v20 }
 0x41f   :  { %v307_v22 = vadd.f32 1e-05, %v306_v21 }
 0x421   :  { %568 = vrsqrt.f32 %v307_v22 }
 0x42e   :  { %v569_v24 = vpop.eup %568 }
 0x42f   :  { %v313_v26 = vmul.f32 %v569_v24, %v312_v23 }
 0x431   :  { %v314_v0 = vmul.f32 %v313_v26, %v296_v3 }
 0x433   :  { %v319_v27 = vadd.f32 %v318_v25, %v314_v0 }
 0x435   :  { %v320_v28 = vmax.f32 %v319_v27, 0.0 }
 0x437   :  { %v321_v29 = vpack.c.bf16 %v320_v28, %v320_v28 }
 0x439   :  { %537 = vmatmul.mubr.bf16.vlgmr.msra.gmra.mxu0 %v321_v29 }
 0x4f9   :  { %v427_v30 = vpop.f32.mrf.mxu0 }
 0x4fa   :  { %v428_v31 = vadd.f32 %v462_v9, %v427_v30 }
 0x4fb   :  { %v538_v32 = vpop.f32.mrf.mxu0 }
 0x4fc   :  { %433 = vst [vmem:[#allocation8] sm:$0xff] %v428_v31 }
 0x4fd   :  { %v430_v33 = vpop.f32.mrf.mxu0 }
 0x4fe   :  { %641 = shalt.err (!%p638_p5)
}
 0x4ff   :  { %443 = dma.vmem_to_hbm [thread:$0]  %s441_s18, 128, %s791_s6, [#allocation4]   ;;  %v539_v5 = vpop.f32.mrf.mxu0 }
 0x500   :  { %654 = dma.done.wait [#allocation4], 128  }
 0x501   :  { %655 = vsyncadd [#allocation4], 4294967168 }
 0x502   :  { %447 = vsyncpa [#allocation3], 1 }
 0x503   :  { %448 = vsyncpa [#allocation6], 1 }
 0x504   :  { %449 = vsyncpa [#allocation4], 1 }

</bundles_post_ra>
